<compile_context>
chip_gen: v7x
topology: tpu7x:2x2x1
jax: 0.10.0
libtpu: 0.0.40
codegen_flags: <defaults>
</compile_context>

<pallas_src>
import math
import functools

import jax
import jax.numpy as jnp
from jax import lax
from jax.experimental import pallas as pl
from jax.experimental.pallas import tpu as pltpu


def _vmem_limit_bytes():
    cap = 64 * 1024 * 1024
    try:
        info = pltpu.get_tpu_info()
        cap = getattr(info, "vmem_capacity_bytes", cap) or cap
    except Exception:
        pass
    # Leave ~25% headroom for compiler-internal scratch; never below 48 MiB,
    # never above 96 MiB (v5e/v6e have 128 MiB physical, v7x has 64 MiB).
    return int(min(96 * 1024 * 1024, (cap * 3) // 4))


def _default_heads_per_block(num_heads):
    for c in (4, 3, 2, 1):
        if num_heads % c == 0:
            return c
    return 1


def _bert_attention_kernel(
    *refs,
    head_dim, heads_per_block, num_head_blocks,
    with_probs, with_xc, compute_dtype, approx_recip,
):
    refs = list(refs)
    x_ref = refs.pop(0)                       # (1, S, H)  original dtype (f32)
    xc_ref = refs.pop(0) if with_xc else None  # (1, S, H)  compute dtype
    wqkv_ref = refs.pop(0)                    # (1, H, 3*HPB*hd)  compute dtype
    bqkv_ref = refs.pop(0)                    # (1, 1, 3*HPB*hd)  f32
    wo_ref = refs.pop(0)                      # (H, H)            compute dtype
    bo_ref = refs.pop(0)                      # (1, H) f32
    gamma_ref = refs.pop(0)                   # (1, H) f32
    beta_ref = refs.pop(0)                    # (1, H) f32
    out_ref = refs.pop(0)                     # (1, S, H) f32
    probs_ref = refs.pop(0) if with_probs else None   # (1, HPB, S, S) f32
    ctx_ref = refs.pop(0)                     # (NHB, S, HPB*hd)  compute dtype

    hb = pl.program_id(1)
    hd = head_dim
    hpb = heads_per_block
    hpb_hd = hpb * hd
    cd = compute_dtype

    x_f32 = x_ref[0].astype(jnp.float32)      # kept resident for the residual
    x_c = xc_ref[0] if with_xc else x_ref[0]

    # Fused per-block QKV projection: one wide-N MXU matmul, f32 accumulate.
    # Softmax scale is already folded into the Q weight/bias.
    proj = jnp.dot(x_c, wqkv_ref[0], preferred_element_type=jnp.float32)
    proj = proj + bqkv_ref[0]                 # (S, 3*HPB*hd) f32

    ctx_parts = []
    for j in range(hpb):
        qh = proj[:, j * hd:(j + 1) * hd]
        kh = proj[:, hpb_hd + j * hd: hpb_hd + (j + 1) * hd]
        vh = proj[:, 2 * hpb_hd + j * hd: 2 * hpb_hd + (j + 1) * hd]

        # scores = qh @ kh^T without an explicit transpose (contract last dims).
        scores = lax.dot_general(
            qh.astype(cd), kh.astype(cd),
            dimension_numbers=(((1,), (1,)), ((), ())),
            preferred_element_type=jnp.float32,
        )                                     # (S, S) f32

        # Numerically stable softmax, f32 throughout.
        m = jnp.max(scores, axis=-1, keepdims=True)
        e = jnp.exp(scores - m)
        denom = jnp.sum(e, axis=-1, keepdims=True)
        probs = e * pl.reciprocal(denom, approx=approx_recip)

        if with_probs:
            probs_ref[0, j] = probs           # pipelined HBM writeback

        ctx = jnp.dot(probs.astype(cd), vh.astype(cd),
                      preferred_element_type=jnp.float32)   # (S, hd)
        ctx_parts.append(ctx.astype(ctx_ref.dtype))

    ctx_block = ctx_parts[0] if hpb == 1 else jnp.concatenate(ctx_parts, axis=-1)
    ctx_ref[hb] = ctx_block                   # disjoint slot, no RMW accumulator

    # BertSelfOutput: dense + bias + residual + LayerNorm(eps=1e-12), f32.
    @pl.when(hb == num_head_blocks - 1)
    def _finalize():
        wo = wo_ref[...]                      # (H, H) compute dtype, resident
        dense = bo_ref[...].astype(jnp.float32)          # (1, H) broadcast
        for b_i in range(num_head_blocks):
            dense = dense + jnp.dot(
                ctx_ref[b_i], wo[b_i * hpb_hd:(b_i + 1) * hpb_hd, :],
                preferred_element_type=jnp.float32)       # full-depth K = HPB*hd
        resid = dense + x_f32
        mean = jnp.mean(resid, axis=-1, keepdims=True)
        centered = resid - mean
        var = jnp.mean(centered * centered, axis=-1, keepdims=True)
        inv_std = lax.rsqrt(var + 1e-12)
        out_ref[0] = (centered * inv_std * gamma_ref[...] + beta_ref[...]
                      ).astype(out_ref.dtype)


def prepare_params(params, *, num_heads, heads_per_block=None,
                   compute_dtype=jnp.bfloat16):
    """One-time weight prep (hoisted out of the forward path)."""
    H = params["wq"].shape[0]
    assert H % num_heads == 0
    hd = H // num_heads
    if heads_per_block is None:
        heads_per_block = _default_heads_per_block(num_heads)
    assert num_heads % heads_per_block == 0
    nhb = num_heads // heads_per_block
    hpb_hd = heads_per_block * hd
    scale = 1.0 / math.sqrt(hd)

    def w_blocks(w):   # (H, H) -> (NHB, H, HPB*hd)
        return w.reshape(H, nhb, hpb_hd).transpose(1, 0, 2)

    def b_blocks(b):   # (1, H) -> (NHB, 1, HPB*hd)
        return b.reshape(nhb, 1, hpb_hd)

    # Fused [Q | K | V] per-head-block weights; softmax scale folded into Q.
    wqkv = jnp.concatenate(
        [w_blocks(params["wq"] * scale), w_blocks(params["wk"]),
         w_blocks(params["wv"])], axis=-1).astype(compute_dtype)
    bqkv = jnp.concatenate(
        [b_blocks(params["bq"] * scale), b_blocks(params["bk"]),
         b_blocks(params["bv"])], axis=-1).astype(jnp.float32)

    return {
        "wqkv": wqkv,
        "bqkv": bqkv,
        "wo": params["wo"].astype(compute_dtype),
        "bo": params["bo"].astype(jnp.float32),
        "gamma": params["gamma"].astype(jnp.float32),
        "beta": params["beta"].astype(jnp.float32),
        "num_heads": num_heads,
        "heads_per_block": heads_per_block,
        "head_dim": hd,
        "compute_dtype": compute_dtype,
    }


def bert_attention(x, prep, *, output_attention=False, approx_recip=False):
    B, S, H = x.shape
    nh = prep["num_heads"]
    hpb = prep["heads_per_block"]
    hd = prep["head_dim"]
    nhb = nh // hpb
    cd = prep["compute_dtype"]
    with_xc = x.dtype != jnp.dtype(cd)

    x_spec = pl.BlockSpec((1, S, H), lambda b, h: (b, 0, 0))
    in_specs = [x_spec]
    call_args = [x]
    if with_xc:
        in_specs.append(x_spec)
        call_args.append(x.astype(cd))      # pre-cast once, resident per batch
    in_specs += [
        pl.BlockSpec((1, H, 3 * hpb * hd), lambda b, h: (h, 0, 0)),   # wqkv
        pl.BlockSpec((1, 1, 3 * hpb * hd), lambda b, h: (h, 0, 0)),   # bqkv
        pl.BlockSpec((H, H), lambda b, h: (0, 0)),                    # wo (resident)
        pl.BlockSpec((1, H), lambda b, h: (0, 0)),                    # bo
        pl.BlockSpec((1, H), lambda b, h: (0, 0)),                    # gamma
        pl.BlockSpec((1, H), lambda b, h: (0, 0)),                    # beta
    ]
    call_args += [prep["wqkv"], prep["bqkv"], prep["wo"], prep["bo"],
                  prep["gamma"], prep["beta"]]

    out_spec = pl.BlockSpec((1, S, H), lambda b, h: (b, 0, 0))
    if output_attention:
        out_shape = (jax.ShapeDtypeStruct((B, S, H), jnp.float32),
                     jax.ShapeDtypeStruct((B, nh, S, S), jnp.float32))
        out_specs = [out_spec,
                     pl.BlockSpec((1, hpb, S, S), lambda b, h: (b, h, 0, 0))]
    else:
        out_shape = jax.ShapeDtypeStruct((B, S, H), jnp.float32)
        out_specs = out_spec

    kernel = functools.partial(
        _bert_attention_kernel,
        head_dim=hd,
        heads_per_block=hpb,
        num_head_blocks=nhb,
        with_probs=output_attention,
        with_xc=with_xc,
        compute_dtype=cd,
        approx_recip=approx_recip,
    )

    result = pl.pallas_call(
        kernel,
        out_shape=out_shape,
        grid_spec=pltpu.PrefetchScalarGridSpec(
            num_scalar_prefetch=0,
            grid=(B, nhb),                   # head-block (reduction) axis last
            in_specs=in_specs,
            out_specs=out_specs,
            scratch_shapes=[pltpu.VMEM((nhb, S, hpb * hd), cd)],   # ctx slots
        ),
        compiler_params=pltpu.CompilerParams(
            dimension_semantics=("parallel", "arbitrary"),
            vmem_limit_bytes=_vmem_limit_bytes(),
        ),
    )(*call_args)

    if output_attention:
        return result[0], result[1]
    return result, None


def init_params(key, hidden_size):
    H = hidden_size
    ks = jax.random.split(key, 8)
    scale = 1.0 / math.sqrt(H)
    # weights stored as [in, out] (pre-transposed vs. PyTorch nn.Linear)
    return {
        "wq": jax.random.normal(ks[0], (H, H), jnp.float32) * scale,
        "bq": jax.random.normal(ks[1], (1, H), jnp.float32) * 0.02,
        "wk": jax.random.normal(ks[2], (H, H), jnp.float32) * scale,
        "bk": jax.random.normal(ks[3], (1, H), jnp.float32) * 0.02,
        "wv": jax.random.normal(ks[4], (H, H), jnp.float32) * scale,
        "bv": jax.random.normal(ks[5], (1, H), jnp.float32) * 0.02,
        "wo": jax.random.normal(ks[6], (H, H), jnp.float32) * scale,
        "bo": jax.random.normal(ks[7], (1, H), jnp.float32) * 0.02,
        "gamma": jnp.ones((1, H), jnp.float32),
        "beta": jnp.zeros((1, H), jnp.float32),
    }


def reference_jax(x, params, num_heads):
    """Pure-JAX reference matching the PyTorch forward (eval mode)."""
    B, S, H = x.shape
    hd = H // num_heads
    q = x @ params["wq"] + params["bq"][0]
    k = x @ params["wk"] + params["bk"][0]
    v = x @ params["wv"] + params["bv"][0]

    def split(t):
        return t.reshape(B, S, num_heads, hd).transpose(0, 2, 1, 3)

    q, k, v = split(q), split(k), split(v)
    scores = jnp.einsum("bhqd,bhkd->bhqk", q, k) / math.sqrt(hd)
    probs = jax.nn.softmax(scores, axis=-1)
    ctx = jnp.einsum("bhqk,bhkd->bhqd", probs, v)
    ctx = ctx.transpose(0, 2, 1, 3).reshape(B, S, H)
    dense = ctx @ params["wo"] + params["bo"][0]
    resid = dense + x
    mean = resid.mean(-1, keepdims=True)
    var = ((resid - mean) ** 2).mean(-1, keepdims=True)
    normed = (resid - mean) / jnp.sqrt(var + 1e-12)
    return normed * params["gamma"][0] + params["beta"][0], probs


if __name__ == "__main__":
    B, S, H, NH = 2, 8, 32, 4

    key = jax.random.PRNGKey(0)
    kx, kp = jax.random.split(key)
    x = jax.random.normal(kx, (B, S, H), jnp.float32)
    params = init_params(kp, H)

    ref_out, ref_probs = reference_jax(x, params, NH)

    # Precise path: f32 compute, 2 heads per grid step (exercises the
    # multi-head-block ctx slots + finalize accumulation), probs output on.
    prep_f32 = prepare_params(params, num_heads=NH, heads_per_block=2,
                              compute_dtype=jnp.float32)
    out, probs = bert_attention(x, prep_f32, output_attention=True,
                                approx_recip=False)
    out = jax.block_until_ready(out)
    probs = jax.block_until_ready(probs)
    assert probs.shape == (B, NH, S, S)
    assert jnp.allclose(out, ref_out, atol=1e-4, rtol=1e-4), "output mismatch (f32)"
    assert jnp.allclose(probs, ref_probs, atol=1e-4, rtol=1e-4), "probs mismatch (f32)"

    # Default fast path: bf16 MXU matmuls (f32 accumulation), fused head block,
    # approx softmax reciprocal.  Both output and probs are validated.
    prep_bf16 = prepare_params(params, num_heads=NH)      # bf16 by default
    out_fast, probs_fast = bert_attention(x, prep_bf16, output_attention=True,
                                          approx_recip=True)
    out_fast = jax.block_until_ready(out_fast)
    probs_fast = jax.block_until_ready(probs_fast)
    assert bool(jnp.all(jnp.isfinite(out_fast)))
    assert jnp.allclose(out_fast, ref_out, atol=0.2, rtol=0.05), "output mismatch (bf16)"
    assert jnp.allclose(probs_fast, ref_probs, atol=0.03, rtol=0.05), "probs mismatch (bf16)"

    # No-probs variant (no probs out_shape / writeback at all).
    out_np, none_probs = bert_attention(x, prep_bf16, output_attention=False,
                                        approx_recip=True)
    out_np = jax.block_until_ready(out_np)
    assert none_probs is None
    assert jnp.allclose(out_np, ref_out, atol=0.2, rtol=0.05), "output mismatch (bf16/no-probs)"

    print("KERNEL_OK")
</pallas_src>

<mosaic_0001>
module attributes {stable_mosaic.version = 11 : i64} {
  func.func @_bert_attention_kernel(%arg0: i32, %arg1: i32, %arg2: memref<1x8x32xf32, #tpu.memory_space<vmem>>, %arg3: memref<1x32x48xf32, #tpu.memory_space<vmem>>, %arg4: memref<1x1x48xf32, #tpu.memory_space<vmem>>, %arg5: memref<32x32xf32, #tpu.memory_space<vmem>>, %arg6: memref<1x32xf32, #tpu.memory_space<vmem>>, %arg7: memref<1x32xf32, #tpu.memory_space<vmem>>, %arg8: memref<1x32xf32, #tpu.memory_space<vmem>>, %arg9: memref<1x8x32xf32, #tpu.memory_space<vmem>>, %arg10: memref<1x2x8x8xf32, #tpu.memory_space<vmem>>, %arg11: memref<2x8x16xf32, #tpu.memory_space<vmem>>) attributes {dimension_semantics = [#tpu.dimension_semantics<parallel>, #tpu.dimension_semantics<arbitrary>], iteration_bounds = array<i64: 2, 2>, scalar_prefetch = 0 : i64, scratch_operands = 1 : i64, tpu.core_type = #tpu.core_type<tc>, window_params = [{transform_indices = @transform_0, window_bounds = array<i64: 1, 8, 32>}, {transform_indices = @transform_1, window_bounds = array<i64: 1, 32, 48>}, {transform_indices = @transform_2, window_bounds = array<i64: 1, 1, 48>}, {pipeline_mode = #tpu.pipeline_mode<synchronous>, transform_indices = @transform_3, window_bounds = array<i64: 32, 32>}, {pipeline_mode = #tpu.pipeline_mode<synchronous>, transform_indices = @transform_4, window_bounds = array<i64: 1, 32>}, {pipeline_mode = #tpu.pipeline_mode<synchronous>, transform_indices = @transform_5, window_bounds = array<i64: 1, 32>}, {pipeline_mode = #tpu.pipeline_mode<synchronous>, transform_indices = @transform_6, window_bounds = array<i64: 1, 32>}, {transform_indices = @transform_7, window_bounds = array<i64: 1, 8, 32>}, {transform_indices = @transform_8, window_bounds = array<i64: 1, 2, 8, 8>}]} {
    %c0 = arith.constant 0 : index
    %c0_0 = arith.constant 0 : index
    %c0_1 = arith.constant 0 : index
    %0 = vector.load %arg2[%c0, %c0_0, %c0_1] : memref<1x8x32xf32, #tpu.memory_space<vmem>>, vector<1x8x32xf32>
    %1 = vector.shape_cast %0 : vector<1x8x32xf32> to vector<8x32xf32>
    %c0_2 = arith.constant 0 : index
    %c0_3 = arith.constant 0 : index
    %c0_4 = arith.constant 0 : index
    %2 = vector.load %arg2[%c0_2, %c0_3, %c0_4] : memref<1x8x32xf32, #tpu.memory_space<vmem>>, vector<1x8x32xf32>
    %3 = vector.shape_cast %2 : vector<1x8x32xf32> to vector<8x32xf32>
    %c0_5 = arith.constant 0 : index
    %c0_6 = arith.constant 0 : index
    %c0_7 = arith.constant 0 : index
    %4 = vector.load %arg3[%c0_5, %c0_6, %c0_7] : memref<1x32x48xf32, #tpu.memory_space<vmem>>, vector<1x32x48xf32>
    %5 = vector.shape_cast %4 : vector<1x32x48xf32> to vector<32x48xf32>
    %cst = arith.constant dense<0.000000e+00> : vector<8x48xf32>
    %6 = tpu.matmul %3, %5, %cst {dimension_numbers = #tpu.dot_dimension_numbers<[1], [0], [0], [1], [0, 0, 1, 1], [], []>} : vector<8x32xf32>, vector<32x48xf32>, vector<8x48xf32> -> vector<8x48xf32>
    %c0_8 = arith.constant 0 : index
    %c0_9 = arith.constant 0 : index
    %c0_10 = arith.constant 0 : index
    %7 = vector.load %arg4[%c0_8, %c0_9, %c0_10] : memref<1x1x48xf32, #tpu.memory_space<vmem>>, vector<1x1x48xf32>
    %8 = vector.shape_cast %7 : vector<1x1x48xf32> to vector<1x48xf32>
    %9 = vector.broadcast %8 : vector<1x48xf32> to vector<8x48xf32>
    %10 = arith.addf %6, %9 : vector<8x48xf32>
    %11 = vector.extract_strided_slice %10 {offsets = [0, 0], sizes = [8, 8], strides = [1, 1]} : vector<8x48xf32> to vector<8x8xf32>
    %12 = vector.extract_strided_slice %10 {offsets = [0, 16], sizes = [8, 8], strides = [1, 1]} : vector<8x48xf32> to vector<8x8xf32>
    %13 = vector.extract_strided_slice %10 {offsets = [0, 32], sizes = [8, 8], strides = [1, 1]} : vector<8x48xf32> to vector<8x8xf32>
    %cst_11 = arith.constant dense<0.000000e+00> : vector<8x8xf32>
    %14 = tpu.matmul %11, %12, %cst_11 {dimension_numbers = #tpu.dot_dimension_numbers<[1], [1], [0], [0], [0, 0, 1, 0], [], []>} : vector<8x8xf32>, vector<8x8xf32>, vector<8x8xf32> -> vector<8x8xf32>
    %cst_12 = arith.constant dense<0xFF800000> : vector<8xf32>
    %15 = vector.multi_reduction <maximumf>, %14, %cst_12 [1] : vector<8x8xf32> to vector<8xf32>
    %16 = vector.shape_cast %15 : vector<8xf32> to vector<8x1xf32>
    %17 = vector.broadcast %16 : vector<8x1xf32> to vector<8x8xf32>
    %18 = arith.subf %14, %17 : vector<8x8xf32>
    %19 = math.exp %18 : vector<8x8xf32>
    %cst_13 = arith.constant dense<0.000000e+00> : vector<8xf32>
    %20 = vector.multi_reduction <add>, %19, %cst_13 [1] : vector<8x8xf32> to vector<8xf32>
    %21 = vector.shape_cast %20 : vector<8xf32> to vector<8x1xf32>
    %22 = tpu.reciprocal %21 : vector<8x1xf32> -> vector<8x1xf32>
    %23 = vector.broadcast %22 : vector<8x1xf32> to vector<8x8xf32>
    %24 = arith.mulf %19, %23 : vector<8x8xf32>
    %c0_14 = arith.constant 0 : index
    %c0_15 = arith.constant 0 : index
    %c0_16 = arith.constant 0 : index
    %c0_17 = arith.constant 0 : index
    %25 = vector.load %arg10[%c0_14, %c0_15, %c0_16, %c0_17] : memref<1x2x8x8xf32, #tpu.memory_space<vmem>>, vector<1x1x8x8xf32>
    %26 = vector.shape_cast %25 : vector<1x1x8x8xf32> to vector<8x8xf32>
    %27 = vector.shape_cast %24 : vector<8x8xf32> to vector<1x1x8x8xf32>
    tpu.vector_store %arg10[%c0_14, %c0_15, %c0_16, %c0_17], %27 {strides = array<i32>} : memref<1x2x8x8xf32, #tpu.memory_space<vmem>>, vector<1x1x8x8xf32>,
    %cst_18 = arith.constant dense<0.000000e+00> : vector<8x8xf32>
    %28 = tpu.matmul %24, %13, %cst_18 {dimension_numbers = #tpu.dot_dimension_numbers<[1], [0], [0], [1], [0, 0, 1, 1], [], []>} : vector<8x8xf32>, vector<8x8xf32>, vector<8x8xf32> -> vector<8x8xf32>
    %29 = vector.extract_strided_slice %10 {offsets = [0, 8], sizes = [8, 8], strides = [1, 1]} : vector<8x48xf32> to vector<8x8xf32>
    %30 = vector.extract_strided_slice %10 {offsets = [0, 24], sizes = [8, 8], strides = [1, 1]} : vector<8x48xf32> to vector<8x8xf32>
    %31 = vector.extract_strided_slice %10 {offsets = [0, 40], sizes = [8, 8], strides = [1, 1]} : vector<8x48xf32> to vector<8x8xf32>
    %cst_19 = arith.constant dense<0.000000e+00> : vector<8x8xf32>
    %32 = tpu.matmul %29, %30, %cst_19 {dimension_numbers = #tpu.dot_dimension_numbers<[1], [1], [0], [0], [0, 0, 1, 0], [], []>} : vector<8x8xf32>, vector<8x8xf32>, vector<8x8xf32> -> vector<8x8xf32>
    %cst_20 = arith.constant dense<0xFF800000> : vector<8xf32>
    %33 = vector.multi_reduction <maximumf>, %32, %cst_20 [1] : vector<8x8xf32> to vector<8xf32>
    %34 = vector.shape_cast %33 : vector<8xf32> to vector<8x1xf32>
    %35 = vector.broadcast %34 : vector<8x1xf32> to vector<8x8xf32>
    %36 = arith.subf %32, %35 : vector<8x8xf32>
    %37 = math.exp %36 : vector<8x8xf32>
    %cst_21 = arith.constant dense<0.000000e+00> : vector<8xf32>
    %38 = vector.multi_reduction <add>, %37, %cst_21 [1] : vector<8x8xf32> to vector<8xf32>
    %39 = vector.shape_cast %38 : vector<8xf32> to vector<8x1xf32>
    %40 = tpu.reciprocal %39 : vector<8x1xf32> -> vector<8x1xf32>
    %41 = vector.broadcast %40 : vector<8x1xf32> to vector<8x8xf32>
    %42 = arith.mulf %37, %41 : vector<8x8xf32>
    %c0_22 = arith.constant 0 : index
    %c1 = arith.constant 1 : index
    %c0_23 = arith.constant 0 : index
    %c0_24 = arith.constant 0 : index
    %43 = vector.load %arg10[%c0_22, %c1, %c0_23, %c0_24] : memref<1x2x8x8xf32, #tpu.memory_space<vmem>>, vector<1x1x8x8xf32>
    %44 = vector.shape_cast %43 : vector<1x1x8x8xf32> to vector<8x8xf32>
    %45 = vector.shape_cast %42 : vector<8x8xf32> to vector<1x1x8x8xf32>
    tpu.vector_store %arg10[%c0_22, %c1, %c0_23, %c0_24], %45 {strides = array<i32>} : memref<1x2x8x8xf32, #tpu.memory_space<vmem>>, vector<1x1x8x8xf32>,
    %cst_25 = arith.constant dense<0.000000e+00> : vector<8x8xf32>
    %46 = tpu.matmul %42, %31, %cst_25 {dimension_numbers = #tpu.dot_dimension_numbers<[1], [0], [0], [1], [0, 0, 1, 1], [], []>} : vector<8x8xf32>, vector<8x8xf32>, vector<8x8xf32> -> vector<8x8xf32>
    %47 = tpu.concatenate %28, %46 in 1 : vector<8x8xf32>, vector<8x8xf32> -> vector<8x16xf32>
    %48 = arith.index_cast %arg1 : i32 to index
    %c0_26 = arith.constant 0 : index
    %c0_27 = arith.constant 0 : index
    %49 = vector.load %arg11[%48, %c0_26, %c0_27] : memref<2x8x16xf32, #tpu.memory_space<vmem>>, vector<1x8x16xf32>
    %50 = vector.shape_cast %49 : vector<1x8x16xf32> to vector<8x16xf32>
    %51 = vector.shape_cast %47 : vector<8x16xf32> to vector<1x8x16xf32>
    tpu.vector_store %arg11[%48, %c0_26, %c0_27], %51 {strides = array<i32>} : memref<2x8x16xf32, #tpu.memory_space<vmem>>, vector<1x8x16xf32>,
    %c1_i32 = arith.constant 1 : i32
    %52 = arith.cmpi eq, %arg1, %c1_i32 : i32
    %53 = arith.extui %52 : i1 to i32
    %c0_i32 = arith.constant 0 : i32
    %54 = arith.cmpi ne, %53, %c0_i32 : i32
    scf.if %54 {
      %c0_28 = arith.constant 0 : index
      %c0_29 = arith.constant 0 : index
      %55 = vector.load %arg5[%c0_28, %c0_29] : memref<32x32xf32, #tpu.memory_space<vmem>>, vector<32x32xf32>
      %c0_30 = arith.constant 0 : index
      %c0_31 = arith.constant 0 : index
      %56 = vector.load %arg6[%c0_30, %c0_31] : memref<1x32xf32, #tpu.memory_space<vmem>>, vector<1x32xf32>
      %c0_32 = arith.constant 0 : index
      %c0_33 = arith.constant 0 : index
      %c0_34 = arith.constant 0 : index
      %57 = vector.load %arg11[%c0_32, %c0_33, %c0_34] : memref<2x8x16xf32, #tpu.memory_space<vmem>>, vector<1x8x16xf32>
      %58 = vector.shape_cast %57 : vector<1x8x16xf32> to vector<8x16xf32>
      %59 = vector.extract_strided_slice %55 {offsets = [0, 0], sizes = [16, 32], strides = [1, 1]} : vector<32x32xf32> to vector<16x32xf32>
      %cst_35 = arith.constant dense<0.000000e+00> : vector<8x32xf32>
      %60 = tpu.matmul %58, %59, %cst_35 {dimension_numbers = #tpu.dot_dimension_numbers<[1], [0], [0], [1], [0, 0, 1, 1], [], []>} : vector<8x16xf32>, vector<16x32xf32>, vector<8x32xf32> -> vector<8x32xf32>
      %61 = vector.broadcast %56 : vector<1x32xf32> to vector<8x32xf32>
      %62 = arith.addf %61, %60 : vector<8x32xf32>
      %c1_36 = arith.constant 1 : index
      %c0_37 = arith.constant 0 : index
      %c0_38 = arith.constant 0 : index
      %63 = vector.load %arg11[%c1_36, %c0_37, %c0_38] : memref<2x8x16xf32, #tpu.memory_space<vmem>>, vector<1x8x16xf32>
      %64 = vector.shape_cast %63 : vector<1x8x16xf32> to vector<8x16xf32>
      %65 = vector.extract_strided_slice %55 {offsets = [16, 0], sizes = [16, 32], strides = [1, 1]} : vector<32x32xf32> to vector<16x32xf32>
      %cst_39 = arith.constant dense<0.000000e+00> : vector<8x32xf32>
      %66 = tpu.matmul %64, %65, %cst_39 {dimension_numbers = #tpu.dot_dimension_numbers<[1], [0], [0], [1], [0, 0, 1, 1], [], []>} : vector<8x16xf32>, vector<16x32xf32>, vector<8x32xf32> -> vector<8x32xf32>
      %67 = arith.addf %62, %66 : vector<8x32xf32>
      %68 = arith.addf %67, %1 : vector<8x32xf32>
      %cst_40 = arith.constant dense<0.000000e+00> : vector<8xf32>
      %69 = vector.multi_reduction <add>, %68, %cst_40 [1] : vector<8x32xf32> to vector<8xf32>
      %70 = vector.shape_cast %69 : vector<8xf32> to vector<8x1xf32>
      %cst_41 = arith.constant 3.200000e+01 : f32
      %71 = vector.broadcast %cst_41 : f32 to vector<8x1xf32>
      %72 = arith.divf %70, %71 : vector<8x1xf32>
      %73 = vector.broadcast %72 : vector<8x1xf32> to vector<8x32xf32>
      %74 = arith.subf %68, %73 : vector<8x32xf32>
      %75 = arith.mulf %74, %74 : vector<8x32xf32>
      %cst_42 = arith.constant dense<0.000000e+00> : vector<8xf32>
      %76 = vector.multi_reduction <add>, %75, %cst_42 [1] : vector<8x32xf32> to vector<8xf32>
      %77 = vector.shape_cast %76 : vector<8xf32> to vector<8x1xf32>
      %cst_43 = arith.constant 3.200000e+01 : f32
      %78 = vector.broadcast %cst_43 : f32 to vector<8x1xf32>
      %79 = arith.divf %77, %78 : vector<8x1xf32>
      %cst_44 = arith.constant 9.99999996E-13 : f32
      %80 = vector.broadcast %cst_44 : f32 to vector<8x1xf32>
      %81 = arith.addf %79, %80 : vector<8x1xf32>
      %82 = math.rsqrt %81 : vector<8x1xf32>
      %83 = vector.broadcast %82 : vector<8x1xf32> to vector<8x32xf32>
      %84 = arith.mulf %74, %83 : vector<8x32xf32>
      %c0_45 = arith.constant 0 : index
      %c0_46 = arith.constant 0 : index
      %85 = vector.load %arg7[%c0_45, %c0_46] : memref<1x32xf32, #tpu.memory_space<vmem>>, vector<1x32xf32>
      %86 = vector.broadcast %85 : vector<1x32xf32> to vector<8x32xf32>
      %87 = arith.mulf %84, %86 : vector<8x32xf32>
      %c0_47 = arith.constant 0 : index
      %c0_48 = arith.constant 0 : index
      %88 = vector.load %arg8[%c0_47, %c0_48] : memref<1x32xf32, #tpu.memory_space<vmem>>, vector<1x32xf32>
      %89 = vector.broadcast %88 : vector<1x32xf32> to vector<8x32xf32>
      %90 = arith.addf %87, %89 : vector<8x32xf32>
      %c0_49 = arith.constant 0 : index
      %c0_50 = arith.constant 0 : index
      %c0_51 = arith.constant 0 : index
      %91 = vector.load %arg9[%c0_49, %c0_50, %c0_51] : memref<1x8x32xf32, #tpu.memory_space<vmem>>, vector<1x8x32xf32>
      %92 = vector.shape_cast %91 : vector<1x8x32xf32> to vector<8x32xf32>
      %93 = vector.shape_cast %90 : vector<8x32xf32> to vector<1x8x32xf32>
      tpu.vector_store %arg9[%c0_49, %c0_50, %c0_51], %93 {strides = array<i32>} : memref<1x8x32xf32, #tpu.memory_space<vmem>>, vector<1x8x32xf32>,
    } else {
    }
    return
  }
  func.func @transform_0(%arg0: i32, %arg1: i32) -> (i32, i32, i32) {
    %c0_i32 = arith.constant 0 : i32
    %c0_i32_0 = arith.constant 0 : i32
    %c0_i32_1 = arith.constant 0 : i32
    return %arg0, %c0_i32, %c0_i32_0 : i32, i32, i32
  }
  func.func @transform_1(%arg0: i32, %arg1: i32) -> (i32, i32, i32) {
    %c0_i32 = arith.constant 0 : i32
    %c0_i32_0 = arith.constant 0 : i32
    %c0_i32_1 = arith.constant 0 : i32
    return %arg1, %c0_i32, %c0_i32_0 : i32, i32, i32
  }
  func.func @transform_2(%arg0: i32, %arg1: i32) -> (i32, i32, i32) {
    %c0_i32 = arith.constant 0 : i32
    %c0_i32_0 = arith.constant 0 : i32
    %c0_i32_1 = arith.constant 0 : i32
    return %arg1, %c0_i32, %c0_i32_0 : i32, i32, i32
  }
  func.func @transform_3(%arg0: i32, %arg1: i32) -> (i32, i32) {
    %c0_i32 = arith.constant 0 : i32
    %c0_i32_0 = arith.constant 0 : i32
    %c0_i32_1 = arith.constant 0 : i32
    return %c0_i32, %c0_i32_0 : i32, i32
  }
  func.func @transform_4(%arg0: i32, %arg1: i32) -> (i32, i32) {
    %c0_i32 = arith.constant 0 : i32
    %c0_i32_0 = arith.constant 0 : i32
    %c0_i32_1 = arith.constant 0 : i32
    return %c0_i32, %c0_i32_0 : i32, i32
  }
  func.func @transform_5(%arg0: i32, %arg1: i32) -> (i32, i32) {
    %c0_i32 = arith.constant 0 : i32
    %c0_i32_0 = arith.constant 0 : i32
    %c0_i32_1 = arith.constant 0 : i32
    return %c0_i32, %c0_i32_0 : i32, i32
  }
  func.func @transform_6(%arg0: i32, %arg1: i32) -> (i32, i32) {
    %c0_i32 = arith.constant 0 : i32
    %c0_i32_0 = arith.constant 0 : i32
    %c0_i32_1 = arith.constant 0 : i32
    return %c0_i32, %c0_i32_0 : i32, i32
  }
  func.func @transform_7(%arg0: i32, %arg1: i32) -> (i32, i32, i32) {
    %c0_i32 = arith.constant 0 : i32
    %c0_i32_0 = arith.constant 0 : i32
    %c0_i32_1 = arith.constant 0 : i32
    return %arg0, %c0_i32, %c0_i32_0 : i32, i32, i32
  }
  func.func @transform_8(%arg0: i32, %arg1: i32) -> (i32, i32, i32, i32) {
    %c0_i32 = arith.constant 0 : i32
    %c0_i32_0 = arith.constant 0 : i32
    %c0_i32_1 = arith.constant 0 : i32
    return %arg0, %arg1, %c0_i32, %c0_i32_0 : i32, i32, i32, i32
  }
}

</mosaic_0001>

<bundles_post_ra>
// kernel: tpu_custom_call.1
= control target key start
LH: loop header
LB: loop body
LE: loop exit
PB: predicated region body
PF: predicated region fallthrough
CT: control target
= control target key end

     0   :  { %s2362_s0 = inlined_call_operand.hbm [shape: f32[2,8,32], index: 0, kind: input, shape index: {}]   ;;  %s2363_s1 = inlined_call_operand.hbm [shape: f32[2,32,48], index: 1, kind: input, shape index: {}]   ;;  %s2364_s2 = inlined_call_operand.vmem [shape: f32[2,1,48], index: 2, kind: input, shape index: {}]   ;;  %s2365_s3 = inlined_call_operand.hbm [shape: f32[32,32], index: 3, kind: input, shape index: {}]   ;;  %s2366_s4 = inlined_call_operand.vmem [shape: f32[1,32], index: 4, kind: input, shape index: {}]   ;;  %s2367_s5 = inlined_call_operand.vmem [shape: f32[1,32], index: 5, kind: input, shape index: {}]   ;;  %s2368_s6 = inlined_call_operand.vmem [shape: f32[1,32], index: 6, kind: input, shape index: {}]   ;;  %s2369_s7 = inlined_call_operand.hbm [shape: f32[2,8,32], index: 7, kind: output, shape index: {0}]   ;;  %s2370_s8 = inlined_call_operand.hbm [shape: f32[2,4,8,8], index: 8, kind: output, shape index: {1}]  }
   0x1   :  { %2388 = sst [smem:[#allocation27_spill]] %s2362_s0 }
   0x2   :  { %2389 = sst [smem:[#allocation28_spill]] %s2364_s2 }
   0x3   :  { %2390 = sst [smem:[#allocation29_spill]] %s2365_s3 }
   0x4   :  { %2391 = sst [smem:[#allocation30_spill]] %s2366_s4 }
   0x5   :  { %2392 = sst [smem:[#allocation31_spill]] %s2367_s5 }
   0x6   :  { %2393 = sst [smem:[#allocation32_spill]] %s2368_s6 }
   0x7   :  { %2394 = sst [smem:[#allocation33_spill]] %s2369_s7 }
   0x8   :  { %2395 = sst [smem:[#allocation34_spill]] %s2370_s8 }
   0x9   :  { %14 = vsyncpa [#allocation4], 0 }
   0xa   :  { %16 = vsyncpa [#allocation4 + $0x1], 0 }
   0xb   :  { %17 = vsyncpa [#allocation7], 0 }
   0xc   :  { %19 = vsyncpa [#allocation7 + $0x1], 0 }
   0xd   :  { %20 = vsyncpa [#allocation5], 0 }
   0xe   :  { %22 = vsyncpa [#allocation5 + $0x1], 0 }
   0xf   :  { %23 = vsyncpa [#allocation11], 0 }
  0x10   :  { %25 = vsyncpa [#allocation11 + $0x1], 0  ;;  %s1867_s27 = smov 0   ;;  %s1869_s28 = smov 0  }
  0x11   :  { %s1871_s29 = smov 0   ;;  %s1873_s30 = smov 0  }
  0x12   :  { %s1875_s9 = smov 0   ;;  %s1877_s10 = smov 0  }
  0x13   :  { %s1879_s11 = smov 0   ;;  %s1881_s12 = smov 0  }
  0x14   :  { %s1883_s13 = smov 0   ;;  %s1885_s14 = smov 0  }
  0x15   :  { %s1887_s15 = smov 0   ;;  %s1889_s16 = smov 0  }
  0x16   :  { %s1891_s17 = smov 0   ;;  %s1893_s18 = smov 0  }
  0x17 LB: > { %2396 = sst [smem:[#allocation17_spill]] %s1756_s29  ;;  %s1936_s19 = sadd.s32 4294967295, %s1800_s18   ;;  %s1800_s18 = sphi %s1893_s18, %s31_s18   ;;  %s1796_s17 = sphi %s1891_s17, %s2450_s17   ;;  %s1792_s16 = sphi %s1889_s16, %s2459_s16   ;;  %s1788_s15 = sphi %s1887_s15, %s2448_s15   ;;  %s1784_s14 = sphi %s1885_s14, %s2458_s14   ;;  %s1780_s13 = sphi %s1883_s13, %s2447_s13   ;;  %s1776_s12 = sphi %s1881_s12, %s2457_s12   ;;  %s1772_s11 = sphi %s1879_s11, %s2456_s11   ;;  %s1768_s10 = sphi %s1877_s10, %s2455_s10   ;;  %s1764_s9 = sphi %s1875_s9, %s2454_s9   ;;  %s1760_s30 = sphi %s1873_s30, %s2453_s30   ;;  %s1756_s29 = sphi %s1871_s29, %s2444_s29   ;;  %s1752_s28 = sphi %s1869_s28, %s2452_s28   ;;  %s1748_s27 = sphi %s1867_s27, %s2451_s27  }
  0x18   : > { %2397 = sst [smem:[#allocation18_spill]] %s1780_s13  ;;  %p89_p0 = scmp.ne.s32.totalorder %s1764_s9, %s1760_s30 }
  0x19   : > { %2398 = sst [smem:[#allocation19_spill]] %s1788_s15  ;;  %p2374_p1 = scmp.eq.s32.totalorder %s1936_s19, 0 }
  0x1a   : > { %2399 = sst [smem:[#allocation20_spill]] %s1796_s17  ;;  %p1239_p2 = scmp.ge.s32.totalorder %s1800_s18, 1 }
  0x1b   : > { %p264_p3 = scmp.lt.s32.totalorder %s1800_s18, 5  ;;  %p1944_p4 = por %p89_p0, %p2374_p1 }
  0x1c   : > { %s1802_s22 = smov [#allocation8]   ;;  %s2403_s3 = sld [smem:[#allocation29_spill]] }
  0x1d   : > { %s2400_s20 = scalar_select %p1944_p4, 1, 0 }
  0x1e   : > { %p1948_p5 = pnand %p1239_p2, %p264_p3  ;;  %s276_s23 = sshll.u32 %s1802_s22, 4  ;;  %s277_s23 = int_to_ptr.vmem [resolvable:$true] %s276_s23 }
  0x20   : > { %s2401_s21 = scalar_select %p1948_p5, 1, 0 }
  0x21   : > { %p1366_p6 = pneg %p1948_p5 }
  0x22   : > { %s1526_s30 = scalar_lea.hbm %s2403_s3, 512 }
  0x23   : > { %p1956_p7 = pnand %p1366_p6, %p2374_p1  ;;  %p1527_p8 = scmp.ne.s32.totalorder %s2403_s3, %s1526_s30 }
  0x24   : > { %p1533_p12 = scmp.lt.u32.totalorder %s1526_s30, %s2403_s3 }
  0x25   : > { %p1528_p9 = pneg %p1956_p7 }
  0x27   : > { %p1529_p10 = pnand %p1528_p9, %p1527_p8 }
  0x29   : > { %p1530_p11 = pneg %p1529_p10 }
  0x2b   : > { %p1535_p13 = pnand %p1533_p12, %p1530_p11 }
  0x2d   : > { %1538 = shalt.err (!%p1535_p13)
}
  0x2e   : > { %s1539_s6 = scalar_lea.vmem %s277_s23, 512  ;;  %p1547_p6 = scmp.lt.s32.totalorder %s277_s23, %s277_s23 }
  0x2f   : > { %p1540_p0 = scmp.ne.s32.totalorder %s277_s23, %s1539_s6  ;;  %p1548_p1 = scmp.lt.s32.totalorder %s1539_s6, %s1539_s6 }
  0x31   : > { %p1542_p2 = pnand %p1540_p0, %p1528_p9  ;;  %p1549_p4 = por %p1548_p1, %p1547_p6 }
  0x33   : > { %p1543_p3 = pneg %p1542_p2 }
  0x35   : > { %p1550_p5 = pnand %p1549_p4, %p1543_p3 }
  0x37   : > { %1553 = shalt.err (!%p1550_p5)
}
  0x38   : > { %s2377_s7 = smov 128   ;;  %s2378_s6 = smov 8  }
  0x39   : > { %1369 = dma.hbm_to_vmem [thread:$0]  (!%p1956_p7), %s2403_s3, 512, %s277_s23, [#allocation7], %s2377_s7, %s2377_s7, %s2378_s6  }
  0x3a   : > { %s1238_s25 = sadd.s32 4294967294, %s1800_s18   ;;  %s40_s26 = sadd.s32 1, %s1792_s16 }
  0x3b   : > { %s43_s30 = sadd.s32 1, %s1796_s17  ;;  %p41_p1 = scmp.ge.s32.totalorder %s40_s26, 2 }
  0x3c   : > { %s50_s22 = sadd.s32 1, %s1780_s13  ;;  %p57_p4 = scmp.ne.s32.totalorder %s1780_s13, %s1776_s12 }
  0x3d   : > { %p58_p5 = scmp.eq.s32.totalorder %s1800_s18, 0  ;;  %s2461_s26 = smov (%p41_p1, %s40_s26), 0 }
  0x3e   : > { %2404 = sst [smem:[#allocation21_spill]] %s2461_s26  ;;  %s2463_s30 = smov (!%p41_p1, %s43_s30), %s1796_s17 }
  0x3f   : > { %p1994_p7 = por %p58_p5, %p57_p4  ;;  %p63_p8 = scmp.ne.s32.totalorder %s1776_s12, %s1772_s11 }
  0x40   : > { %p45_p9 = scmp.ge.s32.totalorder %s2463_s30, 2  ;;  %s73_s24 = ssub.s32 %s1792_s16, %s2461_s26 }
  0x41   : > { %p2406_p10 = scmp.eq.s32.totalorder %s1936_s19, 0  ;;  %p74_p12 = scmp.eq.s32.totalorder %s73_s24, 0 }
  0x42   : > { %s2465_s30 = smov (%p45_p9, %s2463_s30), 0  ;;  %s76_s15 = sadd.s32 1, %s1768_s10 }
  0x43   : > { %p2007_p11 = por %p2406_p10, %p63_p8  ;;  %2408 = sst [smem:[#allocation22_spill]] %s2465_s30 }
  0x44   : > { %p83_p13 = scmp.ne.s32.totalorder %s1768_s10, %s1764_s9  ;;  %s47_s7 = ssub.s32 %s1796_s17, %s2465_s30 }
  0x45   : > { %s2407_s8 = scalar_select %p2007_p11, 1, 0 }
  0x46   : > { %p223_p0 = scmp.eq.s32.totalorder %s1936_s19, 3  ;;  %p48_p2 = scmp.eq.s32.totalorder %s47_s7, 0 }
  0x47   : > { %p2021_p3 = por %p83_p13, %p58_p5  ;;  %p229_p1 = scmp.eq.s32.totalorder %s1238_s25, 3 }
  0x48   : > { %s2026_s3 = scalar_select %p74_p12, %s1768_s10, %s76_s15  }
  0x49   : > { %s2029_s26 = scalar_select %p48_p2, %s1780_s13, %s50_s22  }
  0x4a   : > { %2410 = sst [smem:[#allocation23_spill]] %s2026_s3  ;;  %p2036_p6 = por %p223_p0, %p57_p4 }
  0x4b   : > { %2411 = sst [smem:[#allocation24_spill]] %s2029_s26  ;;  %s237_s30 = sor.u32 %s73_s24, %s47_s7 }
  0x4c   : > { %s2412_s5 = scalar_select %p2036_p6, 1, 0 }
  0x4d   : > { %s240_s4 = sadd.s32 1, %s1756_s29  ;;  %p2044_p5 = por %p229_p1, %p63_p8 }
  0x4e   : > { %p238_p9 = scmp.eq.s32.totalorder %s237_s30, 0  ;;  %p250_p10 = scmp.ne.s32.totalorder %s1756_s29, %s1752_s28 }
  0x4f   : > { %s2413_s2 = scalar_select %p2044_p5, 1, 0 }
  0x50   : > { %p256_p12 = scmp.ne.s32.totalorder %s1752_s28, %s1748_s27  ;;  %p2057_p4 = por %p250_p10, %p223_p0 }
  0x51   : > { %2414 = sst [smem:[#allocation25_spill]] %s2413_s2  ;;  %p1385_p8 = scmp.lt.s32.totalorder %s1800_s18, 4 }
  0x52   : > { %s2053_s22 = scalar_select %p238_p9, %s1756_s29, %s240_s4  }
  0x53   : > { %s2416_s15 = scalar_select %p2057_p4, 1, 0 }
  0x54   : > { %2415 = sst [smem:[#allocation26_spill]] %s2053_s22  ;;  %p2061_p13 = por %p256_p12, %p229_p1 }
  0x55   : > { %s299_s25 = sand.u32 1, %s1780_s13   ;;  %s1243_s26 = sshll.u32 %s1796_s17, 7 }
  0x56   : > { %s2417_s7 = scalar_select %p2061_p13, 1, 0 }
  0x57   : > { %s1242_s24 = sshll.u32 %s299_s25, 3  ;;  %s2418_s0 = sld [smem:[#allocation27_spill]] }
  0x58   : > { %s303_s4 = scalar_lea.vmem [#allocation3], %s1242_s24  ;;  %p2077_p0 = pnand %p1385_p8, %p1994_p7 }
  0x59   : > { %s310_s22 = sshll.u32 %s303_s4, 4  ;;  %p2083_p2 = pnand %p1385_p8, %p2021_p3  ;;  %s2073_s22 = int_to_ptr.vmem [resolvable:$true] %s310_s22 }
  0x5a   : > { %s300_s30 = scalar_lea.sflag [#allocation4], %s299_s25  ;;  %p1556_p9 = pneg %p2077_p0 }
  0x5d   : > { %s2071_s2 = scalar_lea.hbm %s2418_s0, %s1243_s26  ;;  %s1559_s6 = scalar_lea.hbm %s2418_s0, 256 }
  0x5e   : > { %s1554_s17 = scalar_lea.hbm %s2071_s2, 128  ;;  %p1560_p3 = scmp.lt.u32.totalorder %s2071_s2, %s2418_s0 }
  0x5f   : > { %p1555_p1 = scmp.ne.s32.totalorder %s2071_s2, %s1554_s17  ;;  %p1561_p12 = scmp.lt.u32.totalorder %s1559_s6, %s1554_s17 }
  0x60   : > { %p1563_p13 = scmp.lt.u32.totalorder %s1554_s17, %s2071_s2 }
  0x61   : > { %p1557_p10 = pnand %p1556_p9, %p1555_p1  ;;  %p1562_p8 = por %p1561_p12, %p1560_p3 }
  0x63   : > { %p1558_p7 = pneg %p1557_p10  ;;  %p1564_p5 = por %p1563_p13, %p1562_p8 }
  0x65   : > { %p1565_p4 = pnand %p1564_p5, %p1558_p7 }
  0x67   : > { %1568 = shalt.err (!%p1565_p4)
}
  0x68   : > { %s1569_s25 = scalar_lea.vmem %s2073_s22, 128  ;;  %s1805_s23 = smov [#allocation3]  }
  0x69   : > { %p1570_p1 = scmp.ne.s32.totalorder %s2073_s22, %s1569_s25  ;;  %s1574_s24 = sshll.u32 %s1805_s23, 4  ;;  %s1575_s24 = int_to_ptr.vmem [resolvable:$false] %s1574_s24 }
  0x6a   : > { %s1576_s13 = scalar_lea.vmem %s1575_s24, 256  ;;  %p1577_p11 = scmp.lt.s32.totalorder %s2073_s22, %s1575_s24 }
  0x6b   : > { %p1572_p10 = pnand %p1570_p1, %p1556_p9  ;;  %p1578_p3 = scmp.lt.s32.totalorder %s1576_s13, %s1569_s25 }
  0x6d   : > { %p1573_p6 = pneg %p1572_p10  ;;  %p1579_p12 = por %p1578_p3, %p1577_p11 }
  0x6f   : > { %p1580_p13 = pnand %p1579_p12, %p1573_p6 }
  0x71   : > { %1583 = shalt.err (!%p1580_p13)
}
  0x72   : > { %1373 = dma.hbm_to_vmem [thread:$0]  (!%p2077_p0), %s2071_s2, 128, %s2073_s22, %s300_s30  }
  0x73   : > { %s319_s17 = sand.u32 1, %s1768_s10   ;;  %s1277_s4 = sshll.u32 %s1792_s16, 9 }
  0x74   : > { %s1244_s6 = sshll.u32 %s319_s17, 5  ;;  %s2118_s25 = scalar_lea.hbm %s2363_s1, %s1277_s4 }
  0x75   : > { %s321_s29 = scalar_lea.vmem [#allocation6], %s1244_s6  ;;  %s2421_s13 = sand.u32 1, %s1800_s18  }
  0x76   : > { %s328_s24 = sshll.u32 %s321_s29, 4  ;;  %s2124_s0 = scalar_lea.sflag [#allocation7], %s2421_s13  ;;  %s2120_s24 = int_to_ptr.vmem [resolvable:$true] %s328_s24 }
  0x77   : > { %s1584_s2 = scalar_lea.hbm %s2118_s25, 512  ;;  %p1586_p6 = pneg %p2083_p2 }
  0x78   : > { %p1585_p11 = scmp.ne.s32.totalorder %s2118_s25, %s1584_s2  ;;  %s1589_s30 = scalar_lea.hbm %s2363_s1, 1024 }
  0x79   : > { %p1590_p0 = scmp.lt.u32.totalorder %s2118_s25, %s2363_s1  ;;  %p1591_p9 = scmp.lt.u32.totalorder %s1589_s30, %s1584_s2 }
  0x7a   : > { %p1587_p5 = pnand %p1586_p6, %p1585_p11  ;;  %p1593_p8 = scmp.lt.u32.totalorder %s1584_s2, %s2118_s25 }
  0x7b   : > { %p1592_p7 = por %p1591_p9, %p1590_p0 }
  0x7c   : > { %p1588_p4 = pneg %p1587_p5 }
  0x7d   : > { %p1594_p1 = por %p1593_p8, %p1592_p7 }
  0x7f   : > { %p1595_p10 = pnand %p1594_p1, %p1588_p4 }
  0x81   : > { %1598 = shalt.err (!%p1595_p10)
}
  0x82   : > { %s1599_s4 = scalar_lea.vmem %s2120_s24, 512  ;;  %s1806_s23 = smov [#allocation6]  }
  0x83   : > { %p1600_p3 = scmp.ne.s32.totalorder %s2120_s24, %s1599_s4  ;;  %s1604_s29 = sshll.u32 %s1806_s23, 4  ;;  %s1605_s29 = int_to_ptr.vmem [resolvable:$false] %s1604_s29 }
  0x84   : > { %s1606_s13 = scalar_lea.vmem %s1605_s29, 1024  ;;  %p1607_p11 = scmp.lt.s32.totalorder %s2120_s24, %s1605_s29 }
  0x85   : > { %p1602_p12 = pnand %p1600_p3, %p1586_p6  ;;  %p1608_p5 = scmp.lt.s32.totalorder %s1606_s13, %s1599_s4 }
  0x87   : > { %p1603_p13 = pneg %p1602_p12  ;;  %p1609_p0 = por %p1608_p5, %p1607_p11 }
  0x89   : > { %p1610_p9 = pnand %p1609_p0, %p1603_p13 }
  0x8b   : > { %1613 = shalt.err (!%p1610_p9)
}
  0x8c   : > { %s2422_s2 = smov 8   ;;  %s2423_s22 = smov 128  }
  0x8d   : > { %1376 = dma.hbm_to_vmem [thread:$0]  (!%p2083_p2), %s2118_s25, 512, %s2120_s24, %s2124_s0, %s2423_s22, %s2423_s22, %s2422_s2  }
  0x8e   : > { %p2424_p6 = scmp.ne.s32.totalorder %s2401_s21, 0 }
  0x8f   : > { %s2158_s26 = sand.u32 (!%p2424_p6), 1, %s1776_s12   ;;  %p2425_p4 = scmp.ne.s32.totalorder (!%p2424_p6), %s2407_s8, 0 }
  0x90   : > { %346 = sbr.rel (%p2424_p6) target bundleno = 1956 (0x7a4), region = 48  ;;  %s1248_s30 = sshll.u32 (!%p2424_p6), %s2158_s26, 3 }
  0x91   : > { %s349_s17 = scalar_lea.sflag (!%p2424_p6), [#allocation4], %s2158_s26  ;;  %s352_s3 = scalar_lea.vmem (!%p2424_p6), [#allocation3], %s1248_s30 }
  0x97   : > { %1727 = dma.done.wait (%p2425_p4), %s349_s17, 128  }
  0x98   : > { %1729 = vsyncadd (%p2425_p4), %s349_s17, 4294967168  ;;  %s357_s0 = sand.u32 1, %s1936_s19   ;;  %s359_s21 = sand.u32 1, %s1764_s9  }
  0x99   : > { %s1249_s25 = sshll.u32 %s359_s21, 5  ;;  %s358_s24 = scalar_lea.sflag [#allocation7], %s357_s0 }
  0x9a   : > { %s361_s6 = scalar_lea.vmem [#allocation6], %s1249_s25  ;;  %p2426_p2 = scmp.ne.s32.totalorder %s2400_s20, 0 }
  0x9c   : > { %1731 = dma.done.wait (%p2426_p2), %s358_s24, 512  }
  0x9d   : > { %1733 = vsyncadd (%p2426_p2), %s358_s24, 4294966784  ;;  %p2427_p7 = scmp.eq.s32.totalorder %s1936_s19, 0 }
  0x9f   : > { %1735 = dma.done.wait (%p2427_p7), [#allocation7], 512   ;;  %p2428_p8 = pmov %p2427_p7 }
  0xa0   : > { %v1807_v0 = vmov 0.0|0.0   ;;  %vm1808_vm0 = vmmov 0   ;;  %v1809_v1 = vmov 0.0   ;;  %v416_v2 = vld [vmem:[%s361_s6] sm:$0xff]  ;;  %v417_v3 = vld [vmem:[%s361_s6 + $0x8] sm:$0xff]  ;;  %v418_v4 = vld [vmem:[%s361_s6 + $0x10] sm:$0xff] }
  0xa1   : > { %1737 = vsyncadd (%p2428_p8), [#allocation7], 4294966784  ;;  %1342 = vmatprep.subr.bf16.mxu0 %v1807_v0  ;;  %1305 = vmatprep.mubr.msk.f32.mxu0 %vm1808_vm0, %v1809_v1  ;;  %v1343_v5 = vpack.c.bf16 %v417_v3, %v416_v2  ;;  %v419_v6 = vld [vmem:[%s361_s6 + $0x18] sm:$0xff]  ;;  %vm427_vm1 = vcmask 261120   ;;  %p411_p1 = scmp.lt.s32.totalorder %s1784_s14, 1  ;;  %s2429_s4 = sld [smem:[#allocation28_spill]] }
  0xa2   : > { %1308 = vmatprep.subr.mxu1 %v1809_v1  ;;  %1310 = vmatprep.mubr.msk.f32.mxu1 %vm1808_vm0, %v1809_v1  ;;  %v1346_v7 = vpack.c.bf16 %v419_v6, %v418_v4  ;;  %v2183_v8 = vld [vmem:[%s352_s3] sm:$0xff]  ;;  %s1810_s29 = smov 120   ;;  %s1811_s13 = smov 112   ;;  %vm504_vm2 = vcmask 64512   ;;  %vm841_vm3 = vcmask 130048  }
  0xa3   : > { %1344 = vmatpush3.bf16.msra.mxu0 %v1343_v5  ;;  %s412_s19 = scalar_select %p411_p1, %s1784_s14, 1 }
  0xa4   : > { %1345 = vmatprep.subr.bf16.mxu0 %v1807_v0  ;;  %s1812_s2 = smov 104   ;;  %s1813_s22 = smov 88  }
  0xa5   : > { %s1814_s17 = smov 96   ;;  %s408_s3 = sand.u32 1, %s1752_s28  }
  0xa6   : > { %s1252_s0 = sshll.u32 %s408_s3, 4  ;;  %s1815_s25 = smov 8  }
  0xa7   : > { %1347 = vmatpush3.bf16.msra.mxu0 %v1346_v7  ;;  %s413_s23 = scalar_lea.vmem %s2429_s4, %s412_s19  ;;  %s2210_s21 = scalar_lea.vmem [#allocation10], %s1252_s0 }
  0xa8   : > { %1318 = vmatprep.subr.mxu0 %v1809_v1  ;;  %v1253_v9 = vld [vmem:[%s413_s23] ss:$0 sm:$0xff]  ;;  %s1262_s24 = sshll.u32 %s1784_s14, 3  ;;  %s2226_s19 = scalar_lea.vmem [#allocation9], %s1248_s30 }
  0xa9   : > { %s840_s6 = scalar_lea.vmem [#allocation2], %s1262_s24  ;;  %p1263_p10 = scmp.ne.s32.totalorder %s1784_s14, 1 }
  0xaa   : > { %1306 = vmatmul.mubr.msk.f32.vlgmr.msra.gmra.mrb[0].mxu0 %vm427_vm1, %v2183_v8  ;;  %v847_v46 = vld [vmem:[#allocation8] sm:$0xff] (!%p1263_p10)  ;;  %v848_v47 = vld [vmem:[#allocation8 + $0x8] sm:$0xff] (!%p1263_p10)  ;;  %v849_v48 = vld [vmem:[#allocation8 + $0x10] sm:$0xff] (!%p1263_p10)  ;;  %v1816_v49 = vmov (!%p1263_p10), 0.0|0.0   ;;  %vm1817_vm4 = vmmov (!%p1263_p10), 0   ;;  %v1818_v53 = vmov (!%p1263_p10), 0.0  }
  0xab   : > { %1320 = vmatprep.mubr.msk.f32.mxu0 %vm1808_vm0, %v1809_v1  ;;  %v1349_v50 = vpack.c.bf16 (!%p1263_p10), %v848_v47, %v847_v46  ;;  %v850_v51 = vld [vmem:[#allocation8 + $0x18] sm:$0xff] (!%p1263_p10)  ;;  %s2430_s8 = sld [smem:[#allocation30_spill]] (!%p1263_p10) }
  0xac   : > { %v1352_v52 = vpack.c.bf16 (!%p1263_p10), %v850_v51, %v849_v48 }
  0xb1   : > { %v1265_v56 = vld [vmem:[%s2430_s8] ss:$0 sm:$0xff] (!%p1263_p10) }
 0x17d   : > { %v497_v10 = vpop.f32.mrb[0].mxu0 }
 0x17e   : > { %v498_v11 = vadd.f32 %v1253_v9, %v497_v10  ;;  %v1307_v12 = vpop.f32.mrb[1].mxu0 }
 0x180   : > { %667 = vrot.lane.b32.xlu1 %v498_v11, %s1810_s29  ;;  %502 = vrot.lane.b32.xlu0 %v498_v11, %s1811_s13  ;;  %s2431_s29 = sld [smem:[#allocation31_spill]] (!%p1263_p10) }
 0x184   : > { %669 = vrot.lane.b32.xlu0 %v498_v11, %s1812_s2 }
 0x1f2   : > { %v503_v13 = vpop.permute.xlu0 %502  ;;  %v668_v15 = vpop.permute.xlu1 %667 }
 0x1f3   : > { %1309 = vmatpush3.xpose.msk.msra.mxu1 %vm504_vm2, %v503_v13 }
 0x1f4   : > { %1313 = vmatprep.subr.mxu1 %v1809_v1 }
 0x1f6   : > { %1311 = vmatmul.mubr.msk.f32.vlgmr.msra.gmra.mrb[0].mxu1 %vm504_vm2, %v498_v11  ;;  %v670_v14 = vpop.permute.xlu0 %669 }
 0x1f7   : > { %1319 = vmatpush3.xpose.msk.msra.mxu0 %vm504_vm2, %v670_v14  ;;  %1315 = vmatprep.mubr.msk.f32.mxu1 %vm1808_vm0, %v1809_v1 }
 0x1f8   : > { %1348 = vmatprep.subr.bf16.mxu0 (!%p1263_p10), %v1816_v49 }
 0x1fa   : > { %1321 = vmatmul.mubr.msk.f32.vlgmr.msra.gmra.mrb[2].mxu0 %vm504_vm2, %v668_v15 }
 0x1fb   : > { %1332 = vmatprep.mubr.msk.f32.mxu0 (!%p1263_p10), %vm1817_vm4, %v1818_v53  ;;  %1350 = vmatpush3.bf16.msra.mxu0 (!%p1263_p10), %v1349_v50 }
 0x2c9   : > { %v575_v16 = vpop.f32.mrb[0].mxu1 }
 0x2ca   : > { %v1312_v17 = vpop.f32.mrb[1].mxu1  ;;  %v579_v18 = vsel %vm504_vm2, %v575_v16, -inf }
 0x2cb   : > { %580 = vmax.xlane.f32.xlu1 %v579_v18 }
 0x2cd   : > { %v741_v19 = vpop.f32.mrb[2].mxu0 }
 0x2ce   : > { %v1322_v20 = vpop.f32.mrb[3].mxu0  ;;  %v745_v21 = vsel %vm504_vm2, %v741_v19, -inf }
 0x2cf   : > { %746 = vmax.xlane.f32.xlu0 %v745_v21 }
 0x358   : > { %v581_v22 = vpop.xlane.xlu1 %580 }
 0x359   : > { %v582_v23 = vsub.f32 %v575_v16, %v581_v22 }
 0x35b   : > { %v583_v24 = vmul.f32 1.442695, %v582_v23 }
 0x35c   : > { %v747_v25 = vpop.xlane.xlu0 %746 }
 0x35d   : > { %1516 = vpow2.f32 %v583_v24  ;;  %v748_v26 = vsub.f32 %v741_v19, %v747_v25 }
 0x35f   : > { %v749_v27 = vmul.f32 1.442695, %v748_v26 }
 0x361   : > { %1518 = vpow2.f32 %v749_v27 }
 0x367   : > { %v1517_v28 = vpop.eup %1516 }
 0x368   : > { %v585_v29 = vsel %vm504_vm2, %v1517_v28, 0.0 }
 0x369   : > { %586 = vadd.xlane.f32.xlu0 %v585_v29 }
 0x36b   : > { %v1519_v30 = vpop.eup %1518 }
 0x36c   : > { %v751_v31 = vsel %vm504_vm2, %v1519_v30, 0.0 }
 0x36d   : > { %752 = vadd.xlane.f32.xlu1 %v751_v31 }
 0x37e   : > { %758 = vrot.lane.b32.xlu1 %v498_v11, %s1813_s22  ;;  %s2432_s22 = sld [smem:[#allocation32_spill]] (!%p1263_p10) }
 0x37f   : > { %591 = vrot.lane.b32.xlu0 %v498_v11, %s1814_s17 }
 0x384   : > { %v1268_v12 = vld [vmem:[%s2432_s22] ss:$0 sm:$0xff] (!%p1263_p10) }
 0x3f6   : > { %v587_v32 = vpop.xlane.xlu0 %586 }
 0x3f7   : > { %1520 = vrcp.f32 %v587_v32 }
 0x3fa   : > { %v753_v33 = vpop.xlane.xlu1 %752  ;;  %v592_v34 = vpop.permute.xlu0 %591 }
 0x3fb   : > { %1522 = vrcp.f32 %v753_v33  ;;  %1314 = vmatpush3.msra.mxu1 %v592_v34 }
 0x3fc   : > { %1323 = vmatprep.subr.mxu1 %v1809_v1 }
 0x3fe   : > { %v759_v37 = vpop.permute.xlu1 %758 }
 0x401   : > { %v1521_v35 = vpop.eup %1520 }
 0x402   : > { %v589_v36 = vmul.f32 %v1521_v35, %v1517_v28 }
 0x404   : > { %590 = vst.msk [vmem:[%s2210_s21] sm:$0xff] %vm504_vm2, %v589_v36  ;;  %1316 = vmatmul.mubr.msk.f32.vlgmr.msra.gmra.mrb[2].mxu1 %vm504_vm2, %v589_v36 }
 0x405   : > { %v1523_v38 = vpop.eup %1522  ;;  %1324 = vmatpush3.msra.mxu1 %v759_v37  ;;  %1325 = vmatprep.mubr.msk.f32.mxu1 %vm1808_vm0, %v1809_v1 }
 0x406   : > { %v755_v39 = vmul.f32 %v1523_v38, %v1519_v30  ;;  %1351 = vmatprep.subr.bf16.mxu1 (!%p1263_p10), %v1816_v49 }
 0x408   : > { %1260 = vst.msk [vmem:[%s2210_s21 + $0x8] sm:$0xff] %vm504_vm2, %v755_v39  ;;  %1326 = vmatmul.mubr.msk.f32.vlgmr.msra.gmra.mrb[4].mxu1 %vm504_vm2, %v755_v39 }
 0x409   : > { %1339 = vmatprep.mubr.msk.f32.mxu1 (!%p1263_p10), %vm1817_vm4, %v1818_v53  ;;  %1353 = vmatpush3.bf16.msra.mxu1 (!%p1263_p10), %v1352_v52 }
 0x4d7   : > { %v663_v40 = vpop.f32.mrb[2].mxu1 }
 0x4d8   : > { %v1317_v41 = vpop.f32.mrb[3].mxu1 }
 0x4db   : > { %v830_v42 = vpop.f32.mrb[4].mxu1 }
 0x4dc   : > { %835 = vrot.lane.b32.xlu1 %v830_v42, %s1815_s25  ;;  %v1327_v43 = vpop.f32.mrb[5].mxu1 }
 0x54a   : > { %846 = sbr.rel (%p1263_p10) target bundleno = 1900 (0x76c), region = 64 }
 0x54e   : > { %v836_v44 = vpop.permute.xlu1 %835 }
 0x54f   : > { %v838_v45 = vsel %vm504_vm2, %v663_v40, %v836_v44 }
 0x550   : > { %842 = vst.msk [vmem:[%s840_s6] sm:$0xff] %vm841_vm3, %v838_v45 }
 0x557   : > { %v852_v54 = vld [vmem:[#allocation2] sm:$0xff]  ;;  %v934_v55 = vld [vmem:[#allocation2 + $0x8] sm:$0xff] }
 0x558   : > { %1333 = vmatmul.mubr.msk.f32.vlgmr.msra.gmra.mrb[0].mxu0 %vm841_vm3, %v852_v54  ;;  %1340 = vmatmul.mubr.msk.f32.vlgmr.msra.gmra.mrb[0].mxu1 %vm841_vm3, %v934_v55 }
 0x62b   : > { %v922_v57 = vpop.f32.mrb[0].mxu0  ;;  %v1004_v60 = vpop.f32.mrb[0].mxu1 }
 0x62c   : > { %v932_v58 = vadd.f32 %v1265_v56, %v922_v57  ;;  %v1334_v59 = vpop.f32.mrb[1].mxu0  ;;  %v1341_v61 = vpop.f32.mrb[1].mxu1 }
 0x62e   : > { %v1008_v62 = vadd.f32 %v1004_v60, %v932_v58 }
 0x630   : > { %v1009_v63 = vadd.f32 %v1008_v62, %v2183_v8  ;;  %v1267_v8 = vld [vmem:[%s2431_s29] ss:$0 sm:$0xff] }
 0x632   : > { %v1010_v0 = vsel %vm427_vm1, %v1009_v63, 0.0 }
 0x633   : > { %1011 = vadd.xlane.f32.xlu0 %v1010_v0 }
 0x6c0   : > { %v1012_v1 = vpop.xlane.xlu0 %1011 }
 0x6c1   : > { %v1014_v2 = vmul.f32 0.03125, %v1012_v1 }
 0x6c3   : > { %v1015_v3 = vsub.f32 %v1009_v63, %v1014_v2 }
 0x6c5   : > { %v1016_v4 = vmul.f32 %v1015_v3, %v1015_v3 }
 0x6c7   : > { %v1017_v5 = vsel %vm427_vm1, %v1016_v4, 0.0 }
 0x6c8   : > { %1018 = vadd.xlane.f32.xlu0 %v1017_v5 }
 0x755   : > { %v1019_v6 = vpop.xlane.xlu0 %1018 }
 0x756   : > { %v1020_v7 = vmul.f32 0.03125, %v1019_v6 }
 0x758   : > { %v1021_v9 = vadd.f32 1e-12, %v1020_v7 }
 0x75a   : > { %1524 = vrsqrt.f32 %v1021_v9 }
 0x764   : > { %v1525_v10 = vpop.eup %1524 }
 0x765   : > { %v1023_v11 = vmul.f32 %v1525_v10, %v1015_v3 }
 0x767   : > { %v1031_v13 = vmul.f32 %v1267_v8, %v1023_v11 }
 0x769   : > { %v1039_v14 = vadd.f32 %v1268_v12, %v1031_v13 }
 0x76b   : > { %1040 = vst.msk [vmem:[%s2226_s19] sm:$0xff] %vm427_vm1, %v1039_v14 }
 0x76c PF: > { %s2433_s17 = sld [smem:[#allocation19_spill]]  ;;  %s2434_s30 = sld [smem:[#allocation33_spill]] }
 0x76d   : > { %s1060_s4 = sshll.u32 %s2226_s19, 4  ;;  %s1042_s23 = scalar_lea.sflag [#allocation5], %s2158_s26  ;;  %s1061_s4 = int_to_ptr.vmem [resolvable:$true] %s1060_s4 }
 0x76e   : > { %s1614_s29 = scalar_lea.vmem %s1061_s4, 128  ;;  %p2436_p12 = scmp.ne.s32.totalorder %s2412_s5, 0 }
 0x76f   : > { %p1615_p3 = scmp.ne.s32.totalorder %s1061_s4, %s1614_s29  ;;  %s1819_s13 = smov [#allocation9]  }
 0x770   : > { %s1618_s2 = sshll.u32 %s1819_s13, 4  ;;  %s1619_s2 = int_to_ptr.vmem [resolvable:$false] %s1618_s2 }
 0x771   : > { %p1616_p13 = pnand %p1615_p3, %p2436_p12  ;;  %s1620_s22 = scalar_lea.vmem %s1619_s2, 256 }
 0x772   : > { %s1271_s0 = sshll.u32 %s2433_s17, 7  ;;  %s2435_s20 = smov %s2434_s30 }
 0x773   : > { %s2249_s8 = scalar_lea.hbm %s2434_s30, %s1271_s0  ;;  %p1617_p11 = pneg %p1616_p13 }
 0x774   : > { %p1621_p5 = scmp.lt.s32.totalorder %s1061_s4, %s1619_s2  ;;  %p1622_p0 = scmp.lt.s32.totalorder %s1620_s22, %s1614_s29 }
 0x776   : > { %p1623_p9 = por %p1622_p0, %p1621_p5 }
 0x778   : > { %p1624_p6 = pnand %p1623_p9, %p1617_p11 }
 0x77a   : > { %1627 = shalt.err (!%p1624_p6)
}
 0x77b   : > { %s1628_s26 = scalar_lea.hbm %s2249_s8, 128  ;;  %s1632_s24 = scalar_lea.hbm %s2435_s20, 256 }
 0x77c   : > { %p1629_p4 = scmp.ne.s32.totalorder %s2249_s8, %s1628_s26  ;;  %p1633_p8 = scmp.lt.u32.totalorder %s2249_s8, %s2435_s20 }
 0x77d   : > { %p1634_p1 = scmp.lt.u32.totalorder %s1632_s24, %s1628_s26  ;;  %p1636_p3 = scmp.lt.u32.totalorder %s1628_s26, %s2249_s8 }
 0x77e   : > { %p1630_p2 = pnand %p1629_p4, %p2436_p12 }
 0x77f   : > { %p1635_p10 = por %p1634_p1, %p1633_p8 }
 0x780   : > { %p1631_p7 = pneg %p1630_p2 }
 0x781   : > { %p1637_p13 = por %p1636_p3, %p1635_p10 }
 0x783   : > { %p1638_p11 = pnand %p1637_p13, %p1631_p7 }
 0x785   : > { %1641 = shalt.err (!%p1638_p11)
}
 0x786   : > { %1362 = dma.vmem_to_hbm [thread:$0]  (%p2436_p12), %s1061_s4, 128, %s2249_s8, %s1042_s23  }
 0x787   : > { %s1272_s29 = sshll.u32 %s1784_s14, 1  ;;  %s1273_s13 = sshll.u32 %s2433_s17, 2 }
 0x788   : > { %s1072_s2 = sadd.s32 %s1273_s13, %s1272_s29  ;;  %s1075_s22 = sshll.u32 %s2210_s21, 4  ;;  %s2273_s22 = int_to_ptr.vmem [resolvable:$true] %s1075_s22 }
 0x789   : > { %s1274_s19 = sshll.u32 %s1072_s2, 7  ;;  %s2437_s24 = sld [smem:[#allocation34_spill]] }
 0x78a   : > { %s2282_s6 = scalar_lea.sflag [#allocation11], %s408_s3  ;;  %s1642_s30 = scalar_lea.vmem %s2273_s22, 256 }
 0x78b   : > { %p1643_p12 = scmp.ne.s32.totalorder %s2273_s22, %s1642_s30  ;;  %p2438_p5 = scmp.ne.s32.totalorder %s2416_s15, 0 }
 0x78c   : > { %s1820_s14 = smov [#allocation10]  }
 0x78d   : > { %p1644_p0 = pnand %p1643_p12, %p2438_p5  ;;  %s1646_s21 = sshll.u32 %s1820_s14, 4  ;;  %s1647_s21 = int_to_ptr.vmem [resolvable:$false] %s1646_s21 }
 0x78e   : > { %s1648_s17 = scalar_lea.vmem %s1647_s21, 512  ;;  %p1649_p6 = scmp.lt.s32.totalorder %s2273_s22, %s1647_s21 }
 0x78f   : > { %s2278_s5 = scalar_lea.hbm %s2437_s24, %s1274_s19  ;;  %p1645_p9 = pneg %p1644_p0 }
 0x790   : > { %p1650_p4 = scmp.lt.s32.totalorder %s1648_s17, %s1642_s30 }
 0x792   : > { %p1651_p2 = por %p1650_p4, %p1649_p6 }
 0x794   : > { %p1652_p7 = pnand %p1651_p2, %p1645_p9 }
 0x796   : > { %1655 = shalt.err (!%p1652_p7)
}
 0x797   : > { %s1656_s3 = scalar_lea.hbm %s2278_s5, 256  ;;  %s1660_s23 = scalar_lea.hbm %s2437_s24, 1024 }
 0x798   : > { %p1657_p8 = scmp.ne.s32.totalorder %s2278_s5, %s1656_s3  ;;  %p1661_p3 = scmp.lt.u32.totalorder %s2278_s5, %s2437_s24 }
 0x799   : > { %p1662_p13 = scmp.lt.u32.totalorder %s1660_s23, %s1656_s3  ;;  %p1664_p12 = scmp.lt.u32.totalorder %s1656_s3, %s2278_s5 }
 0x79a   : > { %p1658_p1 = pnand %p1657_p8, %p2438_p5 }
 0x79b   : > { %p1663_p11 = por %p1662_p13, %p1661_p3 }
 0x79c   : > { %p1659_p10 = pneg %p1658_p1 }
 0x79d   : > { %p1665_p0 = por %p1664_p12, %p1663_p11 }
 0x79f   : > { %p1666_p9 = pnand %p1665_p0, %p1659_p10 }
 0x7a1   : > { %1669 = shalt.err (!%p1666_p9)
}
 0x7a2   : > { %s1821_s2 = smov 128  }
 0x7a3   : > { %1363 = dma.vmem_to_hbm [thread:$0]  (%p2438_p5), %s2273_s22, 256, %s2278_s5, %s2282_s6, %s1821_s2, %s1821_s2, %s1815_s25  }
 0x7a4 PF: > { %s2439_s19 = sld [smem:[#allocation25_spill]]  ;;  %p1387_p6 = scmp.ge.s32.totalorder %s1800_s18, 2 }
 0x7a5   : > { %s1090_s26 = sand.u32 1, %s1772_s11  }
 0x7a6   : > { %s1091_s0 = scalar_lea.sflag [#allocation5], %s1090_s26 }
 0x7aa   : > { %p2440_p4 = scmp.ne.s32.totalorder %s2439_s19, 0 }
 0x7ac   : > { %p1378_p2 = pnand %p1387_p6, %p2440_p4 }
 0x7ae   : > { %1739 = dma.done.wait (!%p1378_p2), %s1091_s0, 128  }
 0x7af   : > { %1741 = vsyncadd (!%p1378_p2), %s1091_s0, 4294967168  ;;  %s1099_s30 = sand.u32 1, %s1748_s27   ;;  %p2441_p7 = scmp.ne.s32.totalorder %s2417_s7, 0 }
 0x7b0   : > { %s1100_s15 = scalar_lea.sflag [#allocation11], %s1099_s30 }
 0x7b1   : > { %p1381_p8 = pnand %p1387_p6, %p2441_p7 }
 0x7b3   : > { %1743 = dma.done.wait (!%p1381_p8), %s1100_s15, 256  }
 0x7b4   : > { %1745 = vsyncadd (!%p1381_p8), %s1100_s15, 4294967040  ;;  %s31_s18 = sadd.s32 1, %s1800_s18   ;;  %s2443_s11 = sld [smem:[#allocation17_spill]] }
 0x7b5   : > { %p2315_p5 = scmp.ge.s32.totalorder %s31_s18, 6   ;;  %s2444_s29 = sld [smem:[#allocation26_spill]] }
 0x7b6   : > { %s2445_s22 = sld [smem:[#allocation23_spill]]  ;;  %s2446_s5 = sld [smem:[#allocation18_spill]] }
 0x7b7   : > { %s2447_s13 = sld [smem:[#allocation24_spill]]  ;;  %s2448_s15 = sld [smem:[#allocation20_spill]] }
 0x7b8   : > { %s2449_s7 = sld [smem:[#allocation21_spill]]  ;;  %s2450_s17 = sld [smem:[#allocation22_spill]] }
 0x7b9   : > { %s2451_s27 = smov %s1752_s28  ;;  %s2453_s30 = smov %s1764_s9 }
 0x7ba   : > { %s2452_s28 = smov %s2443_s11  ;;  %s2454_s9 = smov %s1768_s10 }
 0x7bb   : > { %s2456_s11 = smov %s1776_s12  ;;  %s2458_s14 = smov %s1792_s16 }
 0x7bc   : > { %s2455_s10 = smov %s2445_s22  ;;  %s2457_s12 = smov %s2446_s5 }
 0x7bd   :  { %30 = sbr.rel (!%p2315_p5) target bundleno = 23 (0x17), region = 137 }
 0x7be   : > { %s2459_s16 = smov %s2449_s7 }
 0x7c4   :  { %1105 = vsyncpa [#allocation4], 1 }
 0x7c5   :  { %1107 = vsyncpa [#allocation4 + $0x1], 1 }
 0x7c6   :  { %1108 = vsyncpa [#allocation7], 1 }
 0x7c7   :  { %1110 = vsyncpa [#allocation7 + $0x1], 1 }
 0x7c8   :  { %1111 = vsyncpa [#allocation5], 1 }
 0x7c9   :  { %1113 = vsyncpa [#allocation5 + $0x1], 1 }
 0x7ca   :  { %1114 = vsyncpa [#allocation11], 1 }
 0x7cb   :  { %1116 = vsyncpa [#allocation11 + $0x1], 1 }

</bundles_post_ra>
